<compile_context>
chip_gen: v6e
topology: v6e:2x2x1
jax: 0.10.0
libtpu: 0.0.40
codegen_flags: <defaults>
</compile_context>

<pallas_src>
import jax
import jax.numpy as jnp
from jax.experimental import pallas as pl
from jax.experimental.pallas import tpu as pltpu


def _channel_attention_kernel(x_ref, w1t_ref, w2t_ref, o_ref):
    # x_ref  : (TB, C, HW)  activation slab (TB batch elements), HW = full spatial extent
    # w1t_ref: (C, Cr)      first Linear weight, pre-transposed to (K, N)
    # w2t_ref: (Cr, C)      second Linear weight, pre-transposed to (K, N)
    # o_ref  : (TB, C, HW)
    x = x_ref[...].astype(jnp.float32)                     # (TB, C, HW)
    tb = x.shape[0]
    hw = x.shape[-1]

    # --- global pooling over the spatial (lane) axis -> (TB, C) ---
    mx = jnp.max(x, axis=-1)                               # AdaptiveMaxPool  (TB, C)
    av = jnp.sum(x, axis=-1) * (1.0 / hw)                  # AdaptiveAvgPool  (TB, C)

    # --- fused shared MLP: one plain (M,K)x(K,N) matmul pair for both branches ---
    pooled = jnp.concatenate([mx, av], axis=0)             # (2*TB, C)
    h = jnp.maximum(
        jnp.dot(pooled, w1t_ref[...], preferred_element_type=jnp.float32), 0.0)  # (2*TB, Cr)
    y = jnp.dot(h, w2t_ref[...], preferred_element_type=jnp.float32)             # (2*TB, C)

    attn = jax.nn.sigmoid(y[:tb] + y[tb:])                 # (TB, C)

    # Re-read x for the store so the upcast copy is not kept live across the MLP.
    o_ref[...] = (x_ref[...].astype(jnp.float32) * attn[:, :, None]).astype(o_ref.dtype)


def _vmem_capacity_bytes():
    try:
        info = pltpu.get_tpu_info()
        cap = getattr(info, "vmem_capacity_bytes", None)
        if cap:
            return int(cap)
    except Exception:
        pass
    return 64 << 20  # conservative fallback (v7x per-TC capacity)


def _pick_tb(b, bytes_per_b, target_block_bytes):
    """Largest divisor of b whose input block fits the target; prefer >=4 grid
    steps (keeps both v7x TensorCores pipelined), then >=2, then just fit."""
    divs = [d for d in range(1, b + 1) if b % d == 0]
    fits = [d for d in divs if d * bytes_per_b <= target_block_bytes] or [1]
    for min_steps in (4, 2, 1):
        cand = [d for d in fits if b // d >= min_steps]
        if cand:
            return max(cand)
    return 1


@jax.jit
def channel_attention(x_nchw, w1, w2):
    """x_nchw: (B, C, H, W); w1: (C//ratio, C); w2: (C, C//ratio) (torch layout)."""
    B, C, H, W = x_nchw.shape
    HW = H * W

    # No lane padding: block last dim = full HW extent (legal even if % 128 != 0),
    # which avoids two extra full HBM passes (pad + slice) outside the kernel.
    x_flat = x_nchw.reshape(B, C, HW)
    w1t = w1.T                                              # (C, Cr)
    w2t = w2.T                                              # (Cr, C)

    itemsize = jnp.dtype(x_nchw.dtype).itemsize
    bytes_per_b = C * HW * itemsize

    # Generation-aware VMEM budgeting: ~48 MiB on v7x (64 MiB VMEM), ~96 MiB on
    # v5e/v6e (128 MiB VMEM).  Target input blocks of ~budget/8 so that
    # 2x in + 2x out double buffers + ~2 block-sized temps + weights fit.
    vmem_cap = _vmem_capacity_bytes()
    budget = (vmem_cap * 3) // 4
    target_block = max(2 << 20, budget // 8)
    tb = _pick_tb(B, bytes_per_b, target_block)
    grid = B // tb

    block_bytes = tb * bytes_per_b
    weight_bytes = (w1.size + w2.size) * jnp.dtype(w1.dtype).itemsize
    need = 6 * block_bytes + 2 * weight_bytes + (2 << 20)
    vmem_limit = int(min(budget, max(need, 32 << 20)))

    cost = pl.CostEstimate(
        flops=int(2 * B * C * HW + 8 * B * C * max(w1.shape[0], 1)),
        transcendentals=int(B * C),
        bytes_accessed=int(2 * B * C * HW * itemsize),
    )

    out_flat = pl.pallas_call(
        _channel_attention_kernel,
        out_shape=jax.ShapeDtypeStruct((B, C, HW), x_nchw.dtype),
        grid_spec=pltpu.PrefetchScalarGridSpec(
            num_scalar_prefetch=0,
            grid=(grid,),
            in_specs=[
                pl.BlockSpec((tb, C, HW), lambda b: (b, 0, 0)),
                pl.BlockSpec(w1t.shape, lambda b: (0, 0)),   # full weight, resident
                pl.BlockSpec(w2t.shape, lambda b: (0, 0)),   # full weight, resident
            ],
            out_specs=pl.BlockSpec((tb, C, HW), lambda b: (b, 0, 0)),
        ),
        compiler_params=pltpu.CompilerParams(
            dimension_semantics=("parallel",),
            vmem_limit_bytes=vmem_limit,
        ),
        cost_estimate=cost,
    )(x_flat, w1t, w2t)

    return out_flat.reshape(B, C, H, W)


def _reference(x, w1, w2):
    B, C, H, W = x.shape
    xf = x.reshape(B, C, H * W)
    mx = jnp.max(xf, axis=-1)                               # (B, C)
    av = jnp.mean(xf, axis=-1)                              # (B, C)

    def fc(v):
        return jnp.maximum(v @ w1.T, 0.0) @ w2.T

    attn = jax.nn.sigmoid(fc(mx) + fc(av))                  # (B, C)
    return attn[:, :, None, None] * x


if __name__ == "__main__":
    key = jax.random.PRNGKey(0)
    kx, k1, k2, kx2 = jax.random.split(key, 4)

    B, C, H, W = 2, 32, 16, 16      # channel=32, ratio=16 -> hidden=2
    ratio = 16
    Cr = C // ratio

    x = jax.random.normal(kx, (B, C, H, W), dtype=jnp.float32)
    # Deterministic bias-free Linear weights in torch (out_features, in_features) layout.
    w1 = jax.random.normal(k1, (Cr, C), dtype=jnp.float32) * (1.0 / jnp.sqrt(C))
    w2 = jax.random.normal(k2, (C, Cr), dtype=jnp.float32) * (1.0 / jnp.sqrt(Cr))

    out = channel_attention(x, w1, w2)
    jax.block_until_ready(out)
    ref = _reference(x, w1, w2)
    assert out.shape == (B, C, H, W)
    assert jnp.allclose(out, ref, atol=1e-5, rtol=1e-5), "mismatch vs JAX reference"

    # Second check: spatial size not a multiple of 128 (exercises the unaligned
    # full-extent last-dim path -- guards the mask-free max/mean reductions).
    H2, W2 = 15, 15
    x2 = jax.random.normal(kx2, (B, C, H2, W2), dtype=jnp.float32)
    out2 = channel_attention(x2, w1, w2)
    jax.block_until_ready(out2)
    ref2 = _reference(x2, w1, w2)
    assert out2.shape == (B, C, H2, W2)
    assert jnp.allclose(out2, ref2, atol=1e-5, rtol=1e-5), "mismatch vs JAX reference (unaligned)"

    print("KERNEL_OK")
</pallas_src>

<mosaic_0001>
module attributes {stable_mosaic.version = 11 : i64} {
  func.func @_channel_attention_kernel(%arg0: i32, %arg1: memref<1x32x256xf32, #tpu.memory_space<vmem>>, %arg2: memref<32x2xf32, #tpu.memory_space<vmem>>, %arg3: memref<2x32xf32, #tpu.memory_space<vmem>>, %arg4: memref<1x32x256xf32, #tpu.memory_space<vmem>>) attributes {dimension_semantics = [#tpu.dimension_semantics<parallel>], iteration_bounds = array<i64: 2>, scalar_prefetch = 0 : i64, scratch_operands = 0 : i64, tpu.core_type = #tpu.core_type<tc>, window_params = [{transform_indices = @transform_0, window_bounds = array<i64: 1, 32, 256>}, {pipeline_mode = #tpu.pipeline_mode<synchronous>, transform_indices = @transform_1, window_bounds = array<i64: 32, 2>}, {pipeline_mode = #tpu.pipeline_mode<synchronous>, transform_indices = @transform_2, window_bounds = array<i64: 2, 32>}, {transform_indices = @transform_3, window_bounds = array<i64: 1, 32, 256>}]} {
    %c0 = arith.constant 0 : index
    %c0_0 = arith.constant 0 : index
    %c0_1 = arith.constant 0 : index
    %0 = vector.load %arg1[%c0, %c0_0, %c0_1] : memref<1x32x256xf32, #tpu.memory_space<vmem>>, vector<1x32x256xf32>
    %cst = arith.constant dense<0xFF800000> : vector<1x32xf32>
    %1 = vector.multi_reduction <maximumf>, %0, %cst [2] : vector<1x32x256xf32> to vector<1x32xf32>
    %cst_2 = arith.constant dense<0.000000e+00> : vector<1x32xf32>
    %2 = vector.multi_reduction <add>, %0, %cst_2 [2] : vector<1x32x256xf32> to vector<1x32xf32>
    %cst_3 = arith.constant 3.906250e-03 : f32
    %3 = vector.broadcast %cst_3 : f32 to vector<1x32xf32>
    %4 = arith.mulf %2, %3 : vector<1x32xf32>
    %5 = tpu.concatenate %1, %4 in 0 : vector<1x32xf32>, vector<1x32xf32> -> vector<2x32xf32>
    %c0_4 = arith.constant 0 : index
    %c0_5 = arith.constant 0 : index
    %6 = vector.load %arg2[%c0_4, %c0_5] : memref<32x2xf32, #tpu.memory_space<vmem>>, vector<32x2xf32>
    %cst_6 = arith.constant dense<0.000000e+00> : vector<2x2xf32>
    %7 = tpu.matmul %5, %6, %cst_6 {dimension_numbers = #tpu.dot_dimension_numbers<[1], [0], [0], [1], [0, 0, 1, 1], [], []>} : vector<2x32xf32>, vector<32x2xf32>, vector<2x2xf32> -> vector<2x2xf32>
    %cst_7 = arith.constant 0.000000e+00 : f32
    %8 = vector.broadcast %cst_7 : f32 to vector<2x2xf32>
    %9 = arith.maximumf %7, %8 : vector<2x2xf32>
    %c0_8 = arith.constant 0 : index
    %c0_9 = arith.constant 0 : index
    %10 = vector.load %arg3[%c0_8, %c0_9] : memref<2x32xf32, #tpu.memory_space<vmem>>, vector<2x32xf32>
    %cst_10 = arith.constant dense<0.000000e+00> : vector<2x32xf32>
    %11 = tpu.matmul %9, %10, %cst_10 {dimension_numbers = #tpu.dot_dimension_numbers<[1], [0], [0], [1], [0, 0, 1, 1], [], []>} : vector<2x2xf32>, vector<2x32xf32>, vector<2x32xf32> -> vector<2x32xf32>
    %12 = vector.extract_strided_slice %11 {offsets = [0, 0], sizes = [1, 32], strides = [1, 1]} : vector<2x32xf32> to vector<1x32xf32>
    %13 = vector.extract_strided_slice %11 {offsets = [1, 0], sizes = [1, 32], strides = [1, 1]} : vector<2x32xf32> to vector<1x32xf32>
    %14 = arith.addf %12, %13 : vector<1x32xf32>
    %15 = arith.negf %14 : vector<1x32xf32>
    %16 = math.exp %15 : vector<1x32xf32>
    %cst_11 = arith.constant 1.000000e+00 : f32
    %17 = vector.broadcast %cst_11 : f32 to vector<1x32xf32>
    %18 = arith.addf %17, %16 : vector<1x32xf32>
    %19 = arith.divf %17, %18 : vector<1x32xf32>
    %c0_12 = arith.constant 0 : index
    %c0_13 = arith.constant 0 : index
    %c0_14 = arith.constant 0 : index
    %20 = vector.load %arg1[%c0_12, %c0_13, %c0_14] : memref<1x32x256xf32, #tpu.memory_space<vmem>>, vector<1x32x256xf32>
    %21 = vector.shape_cast %19 : vector<1x32xf32> to vector<1x32x1xf32>
    %22 = vector.broadcast %21 : vector<1x32x1xf32> to vector<1x32x256xf32>
    %23 = arith.mulf %20, %22 : vector<1x32x256xf32>
    %c0_15 = arith.constant 0 : index
    %c0_16 = arith.constant 0 : index
    %c0_17 = arith.constant 0 : index
    %24 = vector.load %arg4[%c0_15, %c0_16, %c0_17] : memref<1x32x256xf32, #tpu.memory_space<vmem>>, vector<1x32x256xf32>
    tpu.vector_store %arg4[%c0_15, %c0_16, %c0_17], %23 {strides = array<i32>} : memref<1x32x256xf32, #tpu.memory_space<vmem>>, vector<1x32x256xf32>,
    return
  }
  func.func @transform_0(%arg0: i32) -> (i32, i32, i32) {
    %c0_i32 = arith.constant 0 : i32
    %c0_i32_0 = arith.constant 0 : i32
    %c0_i32_1 = arith.constant 0 : i32
    return %arg0, %c0_i32, %c0_i32_0 : i32, i32, i32
  }
  func.func @transform_1(%arg0: i32) -> (i32, i32) {
    %c0_i32 = arith.constant 0 : i32
    %c0_i32_0 = arith.constant 0 : i32
    %c0_i32_1 = arith.constant 0 : i32
    return %c0_i32, %c0_i32_0 : i32, i32
  }
  func.func @transform_2(%arg0: i32) -> (i32, i32) {
    %c0_i32 = arith.constant 0 : i32
    %c0_i32_0 = arith.constant 0 : i32
    %c0_i32_1 = arith.constant 0 : i32
    return %c0_i32, %c0_i32_0 : i32, i32
  }
  func.func @transform_3(%arg0: i32) -> (i32, i32, i32) {
    %c0_i32 = arith.constant 0 : i32
    %c0_i32_0 = arith.constant 0 : i32
    %c0_i32_1 = arith.constant 0 : i32
    return %arg0, %c0_i32, %c0_i32_0 : i32, i32, i32
  }
}

</mosaic_0001>

<bundles_post_ra>
// kernel: channel_attention.1
= control target key start
LH: loop header
LB: loop body
LE: loop exit
PB: predicated region body
PF: predicated region fallthrough
CT: control target
= control target key end

     0   :  { %s607_s12 = smov 0   ;;  %s686_s0 = inlined_call_operand.vmem [shape: f32[2,32,256], index: 0, kind: input, shape index: {}]   ;;  %s687_s1 = inlined_call_operand.vmem [shape: f32[32,2], index: 1, kind: input, shape index: {}]   ;;  %s688_s2 = inlined_call_operand.vmem [shape: f32[2,32], index: 2, kind: input, shape index: {}]   ;;  %s689_s3 = inlined_call_operand.vmem [shape: f32[2,32,256], index: 3, kind: output, shape index: {}]  }
   0x1 LB: > { %s523_s13 = sadd.s32 4294967295, %s583_s12   ;;  %p527_p0 = scmp.ge.s32.totalorder %s583_s12, 1  ;;  %s583_s12 = sphi %s607_s12, %s13_s12  }
   0x2   : > { %p137_p1 = scmp.lt.s32.totalorder %s583_s12, 3 }
   0x4   : > { %p138_p2 = pnand %p527_p0, %p137_p1 }
   0x5   : > { %p161_p3 = scmp.lt.s32.totalorder (!%p138_p2), %s523_s13, 1 }
   0x6   : > { %141 = sbr.rel (%p138_p2) target bundleno = 725 (0x2d5), region = 32 }
   0xb   : > { %s691_s13 = smov (!%p161_p3, %s523_s13), 1  ;;  %v585_v16 = vmov 0.0   ;;  %v268_v17 = vld [vmem:[%s687_s1 + $0x18] sm:$0xff]  ;;  %v267_v18 = vld [vmem:[%s687_s1 + $0x10] sm:$0xff]  ;;  %v266_v19 = vld [vmem:[%s687_s1 + $0x8] sm:$0xff]  ;;  %vm586_vm0 = vmmov 0   ;;  %v211_v21 = vlaneseq }
   0xc   : > { %s538_s14 = sshll.u32 %s691_s13, 6  ;;  %547 = vmatprep.subr.mxu0 %v585_v16  ;;  %558 = vmatprep.subr.mxu1 %v585_v16  ;;  %v265_v20 = vld [vmem:[%s687_s1] sm:$0xff]  ;;  %vm222_vm1 = vcmask 130112   ;;  %vm229_vm2 = vcmask 195712   ;;  %vm236_vm3 = vcmask 261312   ;;  %vm263_vm4 = vcmask 1040384  }
   0xd   : > { %s165_s17 = scalar_lea.vmem %s686_s0, %s538_s14  ;;  %548 = vmatpush3.msra.mxu0 %v268_v17  ;;  %555 = vmatprep.mubr.msk.f32.mxu0 %vm586_vm0, %v585_v16  ;;  %v212_v22 = vand.u32 127, %v211_v21  ;;  %v214_v26 = vshrl.u32 %v211_v21, 7  ;;  %vm269_vm5 = vcmask 261120   ;;  %v344_v58 = vld [vmem:[%s688_s2] sm:$0x3]  ;;  %vm349_vm6 = vcmask 1041408   ;;  %s170_s30 = scalar_lea.vmem %s689_s3, %s538_s14 }
   0xe   : > { %v623_v0 = vld [vmem:[%s165_s17 + $0x20] sm:$0xff]  ;;  %v625_v1 = vld [vmem:[%s165_s17 + $0x28] sm:$0xff]  ;;  %v633_v5 = vld [vmem:[%s165_s17 + $0x10] sm:$0xff]  ;;  %549 = vmatprep.subr.mxu0 %v585_v16  ;;  %560 = vmatprep.mubr.msk.f32.mxu1 %vm586_vm0, %v585_v16  ;;  %vm345_vm7 = vcmask 15360  }
   0xf   : > { %v627_v2 = vld [vmem:[%s165_s17] sm:$0xff]  ;;  %v197_v3 = vadd.f32 %v625_v1, %v623_v0  ;;  %v631_v4 = vld [vmem:[%s165_s17 + $0x8] sm:$0xff]  ;;  %v635_v6 = vld [vmem:[%s165_s17 + $0x18] sm:$0xff]  ;;  %v185_v15 = vmax.f32 %v623_v0, %v625_v1  ;;  %550 = vmatpush3.msra.mxu0 %v267_v18  ;;  %v217_v25 = vadd.s32 4294967288, %v212_v22  ;;  %v231_v30 = vadd.s32 4294967272, %v212_v22  ;;  %559 = vmatpush3.msk.msra.mxu1 %vm349_vm6, %v344_v58 }
  0x10   : > { %v191_v7 = vadd.f32 %v631_v4, %v627_v2  ;;  %v179_v8 = vmax.f32 %v627_v2, %v631_v4  ;;  %v194_v9 = vadd.f32 %v635_v6, %v633_v5  ;;  %v643_v10 = vld [vmem:[%s165_s17 + $0x30] sm:$0xff]  ;;  %v645_v11 = vld [vmem:[%s165_s17 + $0x38] sm:$0xff]  ;;  %v182_v13 = vmax.f32 %v633_v5, %v635_v6  ;;  %551 = vmatprep.subr.mxu0 %v585_v16 }
  0x11   : > { %198 = vadd.xlane.f32.xlu1 %v197_v3  ;;  %v200_v12 = vadd.f32 %v645_v11, %v643_v10  ;;  %v188_v14 = vmax.f32 %v643_v10, %v645_v11  ;;  %552 = vmatpush3.msra.mxu0 %v266_v19  ;;  %v220_v28 = vsub.s32 %v217_v25, %v214_v26  ;;  %v224_v31 = vadd.s32 4294967280, %v212_v22 }
  0x12   : > { %192 = vadd.xlane.f32.xlu0 %v191_v7  ;;  %553 = vmatprep.subr.mxu0 %v585_v16  ;;  %v215_v33 = vsub.s32 %v212_v22, %v214_v26  ;;  %v234_v38 = vsub.s32 %v231_v30, %v214_v26 }
  0x13   : > { %554 = vmatpush3.msra.mxu0 %v265_v20  ;;  %v227_v40 = vsub.s32 %v224_v31, %v214_v26 }
  0x15   : > { %180 = vmax.xlane.f32.xlu1 %v179_v8 }
  0x16   : > { %195 = vadd.xlane.f32.xlu0 %v194_v9 }
  0x19   : > { %201 = vadd.xlane.f32.xlu1 %v200_v12 }
  0x1a   : > { %183 = vmax.xlane.f32.xlu0 %v182_v13  ;;  %v435_v13 = vsub.s32 0, %v214_v26 }
  0x1d   : > { %189 = vmax.xlane.f32.xlu1 %v188_v14 }
  0x1e   : > { %186 = vmax.xlane.f32.xlu0 %v185_v15 }
  0x9a   : > { %v199_v23 = vpop.xlane.xlu1 %198 }
  0x9b   : > { %v193_v24 = vpop.xlane.xlu0 %192  ;;  %v205_v41 = vmul.f32 0.00390625, %v199_v23 }
  0x9c   : > { %v203_v34 = vmul.f32 0.00390625, %v193_v24 }
  0x9d   : > { %v255_v50 = vrot.slane %v205_v41, %v227_v40 }
  0x9e   : > { %v181_v27 = vpop.xlane.xlu1 %180  ;;  %v246_v42 = vrot.slane %v203_v34, %v215_v33 }
  0x9f   : > { %v196_v29 = vpop.xlane.xlu0 %195  ;;  %v216_v46 = vrot.slane %v181_v27, %v215_v33 }
  0xa0   : > { %v204_v32 = vmul.f32 0.00390625, %v196_v29 }
  0xa2   : > { %v202_v35 = vpop.xlane.xlu1 %201  ;;  %v250_v36 = vrot.slane %v204_v32, %v220_v28 }
  0xa3   : > { %v184_v37 = vpop.xlane.xlu0 %183  ;;  %v206_v39 = vmul.f32 0.00390625, %v202_v35 }
  0xa4   : > { %v221_v43 = vrot.slane %v184_v37, %v220_v28  ;;  %v251_v45 = vsel %vm222_vm1, %v250_v36, %v246_v42 }
  0xa5   : > { %v260_v47 = vrot.slane %v206_v39, %v234_v38  ;;  %v256_v54 = vsel %vm229_vm2, %v255_v50, %v251_v45 }
  0xa6   : > { %v190_v44 = vpop.xlane.xlu1 %189  ;;  %v223_v52 = vsel %vm222_vm1, %v221_v43, %v216_v46 }
  0xa7   : > { %v187_v48 = vpop.xlane.xlu0 %186  ;;  %v235_v49 = vrot.slane %v190_v44, %v234_v38  ;;  %v261_v56 = vsel %vm236_vm3, %v260_v47, %v256_v54 }
  0xa8   : > { %v228_v51 = vrot.slane %v187_v48, %v227_v40 }
  0xaa   : > { %v230_v53 = vsel %vm229_vm2, %v228_v51, %v223_v52 }
  0xab   : > { %v237_v55 = vsel %vm236_vm3, %v235_v49, %v230_v53 }
  0xac   : > { %v264_v57 = vsel %vm263_vm4, %v237_v55, %v261_v56 }
  0xad   : > { %556 = vmatmul.mubr.msk.f32.vlgmr.msra.gmra.mxu0 %vm269_vm5, %v264_v57 }
 0x16d   : > { %v339_v59 = vpop.f32.mrf.mxu0 }
 0x16e   : > { %v343_v60 = vmax.f32 %v339_v59, 0.0 }
 0x16f   : > { %v557_v61 = vpop.f32.mrf.mxu0 }
 0x170   : > { %561 = vmatmul.mubr.msk.f32.vlgmr.msra.gmra.mxu1 %vm345_vm7, %v343_v60 }
 0x230   : > { %v419_v62 = vpop.f32.mrf.mxu1 }
 0x231   : > { %v424_v63 = vrot.slane %v419_v62, 1 }
 0x232   : > { %v562_v3 = vpop.f32.mrf.mxu1 }
 0x233   : > { %v426_v7 = vadd.f32 %v424_v63, %v419_v62 }
 0x235   : > { %v535_v8 = vmul.f32 -1.442695, %v426_v7 }
 0x237   : > { %573 = vpow2.f32 %v535_v8 }
 0x244   : > { %v574_v9 = vpop.eup %573 }
 0x245   : > { %v430_v12 = vadd.f32 1.0, %v574_v9 }
 0x247   : > { %575 = vrcp.f32 %v430_v12 }
 0x254   : > { %v576_v14 = vpop.eup %575 }
 0x255   : > { %v436_v15 = vrot.slane %v576_v14, %v435_v13 }
 0x257   : > { %442 = vbcast.lane.b32.xlu1 %v436_v15, 264  ;;  %438 = vbcast.lane.b32.xlu0 %v436_v15, 256 }
 0x25b   : > { %446 = vbcast.lane.b32.xlu1 %v436_v15, 272 }
 0x25f   : > { %450 = vbcast.lane.b32.xlu1 %v436_v15, 280 }
 0x2c9   : > { %v443_v16 = vpop.permute.xlu1 %442  ;;  %v439_v17 = vpop.permute.xlu0 %438 }
 0x2ca   : > { %v454_v18 = vmul.f32 %v443_v16, %v633_v5  ;;  %v455_v19 = vmul.f32 %v443_v16, %v635_v6  ;;  %v452_v20 = vmul.f32 %v439_v17, %v627_v2  ;;  %v453_v21 = vmul.f32 %v439_v17, %v631_v4 }
 0x2cc   : > { %462 = vst [vmem:[%s170_s30 + $0x10] sm:$0xff] %v454_v18  ;;  %463 = vst [vmem:[%s170_s30 + $0x18] sm:$0xff] %v455_v19 }
 0x2cd   : > { %460 = vst [vmem:[%s170_s30] sm:$0xff] %v452_v20  ;;  %461 = vst [vmem:[%s170_s30 + $0x8] sm:$0xff] %v453_v21  ;;  %v447_v22 = vpop.permute.xlu1 %446 }
 0x2ce   : > { %v456_v23 = vmul.f32 %v447_v22, %v623_v0  ;;  %v457_v24 = vmul.f32 %v447_v22, %v625_v1 }
 0x2d0   : > { %464 = vst [vmem:[%s170_s30 + $0x20] sm:$0xff] %v456_v23  ;;  %465 = vst [vmem:[%s170_s30 + $0x28] sm:$0xff] %v457_v24 }
 0x2d1   : > { %v451_v25 = vpop.permute.xlu1 %450 }
 0x2d2   : > { %v458_v5 = vmul.f32 %v451_v25, %v643_v10  ;;  %v459_v6 = vmul.f32 %v451_v25, %v645_v11 }
 0x2d4   : > { %466 = vst [vmem:[%s170_s30 + $0x30] sm:$0xff] %v458_v5  ;;  %467 = vst [vmem:[%s170_s30 + $0x38] sm:$0xff] %v459_v6 }
 0x2d5 PF: > { %s13_s12 = sadd.s32 1, %s583_s12  }
 0x2d6   : > { %p10_p4 = scmp.ge.s32.totalorder %s13_s12, 4  }
 0x2d8   :  { %12 = sbr.rel (!%p10_p4) target bundleno = 1 (0x1), region = 62 }

</bundles_post_ra>
